<compile_context>
chip_gen: v6e
topology: v6e:2x2x1
jax: 0.10.0
libtpu: 0.0.40
codegen_flags: <defaults>
</compile_context>

<pallas_src>
import functools

import jax
import jax.numpy as jnp
from jax.experimental import pallas as pl
from jax.experimental.pallas import tpu as pltpu


def _round_up(x, m):
    return ((x + m - 1) // m) * m


def _fusion_kernel(*refs, n_feats, single_label, lane_dense_output):
    # refs = (fea_0, ..., fea_{n-1}, w_0, ..., w_{n-1}, bias, out)
    fea_refs = refs[:n_feats]
    w_refs = refs[n_feats:2 * n_feats]
    b_ref = refs[2 * n_feats]
    out_ref = refs[2 * n_feats + 1]

    # Linear over the "virtual concat": independent per-modality MXU dots,
    # summed once (f32 accumulation). Casts are no-ops for f32 callers.
    dots = [
        jnp.dot(
            f_ref[...].astype(jnp.float32),
            w_ref[...].astype(jnp.float32),
            preferred_element_type=jnp.float32,
        )
        for f_ref, w_ref in zip(fea_refs, w_refs)
    ]
    y = dots[0]
    for d in dots[1:]:
        y = y + d
    y = y + b_ref[...].astype(jnp.float32)

    if not single_label:
        # Stable sigmoid as a single EUP tanh (EUP slot is otherwise idle).
        y = 0.5 * (jnp.tanh(0.5 * y) + 1.0)
        # F.normalize(p=1, dim=1): x / max(||x||_1, eps), eps = 1e-12.
        # Exact reciprocal (approx=False) keeps the 1e-5 tolerance.
        denom = jnp.maximum(jnp.sum(jnp.abs(y), axis=1, keepdims=True), 1e-12)
        y = y * pl.reciprocal(denom, approx=False)

    if lane_dense_output:
        # (TB, Cout) -> (Cout, TB): XLU transpose so the VMEM->HBM writeback
        # is 128-lane dense instead of Cout=16-lane masked partial stores.
        y = y.T

    out_ref[...] = y.astype(out_ref.dtype)


def fusion_net_forward(img_fea, point_fea, mesh_fea, w_t, b, *,
                       single_label=False, block_b=512,
                       lane_dense_output=False):
    """Forward pass of fusion_net.

    img_fea / point_fea / mesh_fea: [B, C_i] arrays or None (dropped, like the
    PyTorch module drops None entries before torch.cat).
    w_t: [Cin, Cout] (transposed nn.Linear weight), b: [Cout].
    lane_dense_output=True returns a (Cout, B) array (transposed layout).
    """
    feats = [f for f in (img_fea, point_fea, mesh_fea) if f is not None]
    assert feats, "at least one modality feature must be provided"
    sizes = [f.shape[1] for f in feats]

    B = feats[0].shape[0]
    Cin, Cout = w_t.shape
    assert sum(sizes) == Cin

    # Split the Linear weight row-wise per modality (trace-time only).
    w_slices = []
    off = 0
    for s in sizes:
        w_slices.append(w_t[off:off + s, :])
        off += s
    b2 = b.reshape(1, Cout)

    # ---- Batch tile selection -------------------------------------------
    # Multiple of 8 sublanes (128 lanes when the output is transposed so the
    # (Cout, TB) output block stays layout-legal), capped at block_b, and at
    # least 2 grid steps when B allows it (v7x 2-TC sharding of the
    # "parallel" axis).
    align = 128 if lane_dense_output else 8
    if B <= align:
        TB = B
    else:
        TB = max(align, min(block_b, _round_up(pl.cdiv(B, 2), align)))
    grid = (pl.cdiv(B, TB),)

    in_specs = (
        [pl.BlockSpec((TB, c), lambda i: (i, 0)) for c in sizes]        # feats
        + [pl.BlockSpec((c, Cout), lambda i: (0, 0)) for c in sizes]    # weights (VMEM-resident)
        + [pl.BlockSpec((1, Cout), lambda i: (0, 0))]                   # bias (VMEM-resident)
    )
    if lane_dense_output:
        out_shape = jax.ShapeDtypeStruct((Cout, B), jnp.float32)
        out_specs = pl.BlockSpec((Cout, TB), lambda i: (0, i))
    else:
        out_shape = jax.ShapeDtypeStruct((B, Cout), jnp.float32)
        out_specs = pl.BlockSpec((TB, Cout), lambda i: (i, 0))

    # ---- Lane-padded VMEM footprint estimate ----------------------------
    # Every (rows, cols) f32 block occupies round_up(rows,8)*round_up(cols,128)*4
    # bytes in VMEM regardless of cols; x2 for double buffering. Only override
    # the scoped-VMEM limit if the v5e 16 MiB default would be at risk.
    def _padded_bytes(rows, cols):
        return _round_up(max(rows, 1), 8) * _round_up(max(cols, 1), 128) * 4

    vmem_est = 2 * (sum(_padded_bytes(TB, c) for c in sizes)
                    + _padded_bytes(TB, Cout))
    vmem_est += sum(_padded_bytes(c, Cout) for c in sizes)
    vmem_est += _padded_bytes(1, Cout)

    compiler_kwargs = dict(dimension_semantics=("parallel",))
    if vmem_est > 12 * 1024 * 1024:
        compiler_kwargs["vmem_limit_bytes"] = min(
            int(vmem_est * 3 // 2), 96 * 1024 * 1024)

    kernel = functools.partial(
        _fusion_kernel, n_feats=len(feats), single_label=single_label,
        lane_dense_output=lane_dense_output)

    return pl.pallas_call(
        kernel,
        out_shape=out_shape,
        grid=grid,
        in_specs=in_specs,
        out_specs=out_specs,
        compiler_params=pltpu.CompilerParams(**compiler_kwargs),
    )(*feats, *w_slices, b2)


def init_params(key, in_channel, out_channel):
    # nn.Linear init per module's __init__: weight ~ N(0, 0.01), bias = 0.
    w = 0.01 * jax.random.normal(key, (out_channel, in_channel), dtype=jnp.float32)
    b = jnp.zeros((out_channel,), dtype=jnp.float32)
    return w.T, b  # store transposed for (B,Cin)@(Cin,Cout)


def _reference(feats, w_t, b, single_label=False):
    fea = jnp.concatenate(feats, axis=1)
    y = fea @ w_t + b[None, :]
    if not single_label:
        y = jax.nn.sigmoid(y)
        y = y / jnp.maximum(jnp.sum(jnp.abs(y), axis=1, keepdims=True), 1e-12)
    return y


if __name__ == "__main__":
    key = jax.random.PRNGKey(0)
    k_img, k_point, k_mesh, k_w = jax.random.split(key, 4)

    # Small shapes: batch=256 (splits into two 128-row tiles), per-modality
    # feature dims 16/8/8 -> in_channel=32, out_channel=16.
    B = 256
    c_img, c_point, c_mesh = 16, 8, 8
    in_channel = c_img + c_point + c_mesh
    out_channel = 16

    img_fea = jax.random.normal(k_img, (B, c_img), dtype=jnp.float32)
    point_fea = jax.random.normal(k_point, (B, c_point), dtype=jnp.float32)
    mesh_fea = jax.random.normal(k_mesh, (B, c_mesh), dtype=jnp.float32)

    w_t, b = init_params(k_w, in_channel, out_channel)

    # Case 1: all three modalities, default (B, Cout) output layout.
    out = fusion_net_forward(img_fea, point_fea, mesh_fea, w_t, b,
                             single_label=False)
    out = jax.block_until_ready(out)
    ref = _reference([img_fea, point_fea, mesh_fea], w_t, b)
    assert out.shape == (B, out_channel)
    assert jnp.allclose(out, ref, atol=1e-5, rtol=1e-5), \
        "mismatch vs reference (3 modalities)"

    # Case 2: a missing modality (None), as the PyTorch forward allows.
    w_t2 = w_t[:c_img + c_point, :]  # Linear sized for img+point only
    out2 = fusion_net_forward(img_fea, point_fea, None, w_t2, b,
                              single_label=False)
    out2 = jax.block_until_ready(out2)
    ref2 = _reference([img_fea, point_fea], w_t2, b)
    assert jnp.allclose(out2, ref2, atol=1e-5, rtol=1e-5), \
        "mismatch vs reference (2 modalities)"

    # Case 3: lane-dense (Cout, B) output layout.
    out3 = fusion_net_forward(img_fea, point_fea, mesh_fea, w_t, b,
                              single_label=False, lane_dense_output=True)
    out3 = jax.block_until_ready(out3)
    assert out3.shape == (out_channel, B)
    assert jnp.allclose(out3, ref.T, atol=1e-5, rtol=1e-5), \
        "mismatch vs reference (lane-dense output)"

    # Case 4: single_label=True (raw logits, no sigmoid/normalize).
    out4 = fusion_net_forward(img_fea, point_fea, mesh_fea, w_t, b,
                              single_label=True)
    out4 = jax.block_until_ready(out4)
    ref4 = _reference([img_fea, point_fea, mesh_fea], w_t, b, single_label=True)
    assert jnp.allclose(out4, ref4, atol=1e-5, rtol=1e-5), \
        "mismatch vs reference (single_label)"

    print("KERNEL_OK")
</pallas_src>

<mosaic_0001>
module attributes {stable_mosaic.version = 11 : i64} {
  func.func @_fusion_kernel(%arg0: i32, %arg1: memref<128x16xf32, #tpu.memory_space<vmem>>, %arg2: memref<128x8xf32, #tpu.memory_space<vmem>>, %arg3: memref<128x8xf32, #tpu.memory_space<vmem>>, %arg4: memref<16x16xf32, #tpu.memory_space<vmem>>, %arg5: memref<8x16xf32, #tpu.memory_space<vmem>>, %arg6: memref<8x16xf32, #tpu.memory_space<vmem>>, %arg7: memref<1x16xf32, #tpu.memory_space<vmem>>, %arg8: memref<128x16xf32, #tpu.memory_space<vmem>>) attributes {dimension_semantics = [#tpu.dimension_semantics<parallel>], iteration_bounds = array<i64: 2>, scalar_prefetch = 0 : i64, scratch_operands = 0 : i64, tpu.core_type = #tpu.core_type<tc>, window_params = [{transform_indices = @transform_0, window_bounds = array<i64: 128, 16>}, {transform_indices = @transform_1, window_bounds = array<i64: 128, 8>}, {transform_indices = @transform_2, window_bounds = array<i64: 128, 8>}, {pipeline_mode = #tpu.pipeline_mode<synchronous>, transform_indices = @transform_3, window_bounds = array<i64: 16, 16>}, {pipeline_mode = #tpu.pipeline_mode<synchronous>, transform_indices = @transform_4, window_bounds = array<i64: 8, 16>}, {pipeline_mode = #tpu.pipeline_mode<synchronous>, transform_indices = @transform_5, window_bounds = array<i64: 8, 16>}, {pipeline_mode = #tpu.pipeline_mode<synchronous>, transform_indices = @transform_6, window_bounds = array<i64: 1, 16>}, {transform_indices = @transform_7, window_bounds = array<i64: 128, 16>}]} {
    %c0 = arith.constant 0 : index
    %c0_0 = arith.constant 0 : index
    %0 = vector.load %arg1[%c0, %c0_0] : memref<128x16xf32, #tpu.memory_space<vmem>>, vector<128x16xf32>
    %c0_1 = arith.constant 0 : index
    %c0_2 = arith.constant 0 : index
    %1 = vector.load %arg4[%c0_1, %c0_2] : memref<16x16xf32, #tpu.memory_space<vmem>>, vector<16x16xf32>
    %cst = arith.constant dense<0.000000e+00> : vector<128x16xf32>
    %2 = tpu.matmul %0, %1, %cst {dimension_numbers = #tpu.dot_dimension_numbers<[1], [0], [0], [1], [0, 0, 1, 1], [], []>} : vector<128x16xf32>, vector<16x16xf32>, vector<128x16xf32> -> vector<128x16xf32>
    %c0_3 = arith.constant 0 : index
    %c0_4 = arith.constant 0 : index
    %3 = vector.load %arg2[%c0_3, %c0_4] : memref<128x8xf32, #tpu.memory_space<vmem>>, vector<128x8xf32>
    %c0_5 = arith.constant 0 : index
    %c0_6 = arith.constant 0 : index
    %4 = vector.load %arg5[%c0_5, %c0_6] : memref<8x16xf32, #tpu.memory_space<vmem>>, vector<8x16xf32>
    %cst_7 = arith.constant dense<0.000000e+00> : vector<128x16xf32>
    %5 = tpu.matmul %3, %4, %cst_7 {dimension_numbers = #tpu.dot_dimension_numbers<[1], [0], [0], [1], [0, 0, 1, 1], [], []>} : vector<128x8xf32>, vector<8x16xf32>, vector<128x16xf32> -> vector<128x16xf32>
    %c0_8 = arith.constant 0 : index
    %c0_9 = arith.constant 0 : index
    %6 = vector.load %arg3[%c0_8, %c0_9] : memref<128x8xf32, #tpu.memory_space<vmem>>, vector<128x8xf32>
    %c0_10 = arith.constant 0 : index
    %c0_11 = arith.constant 0 : index
    %7 = vector.load %arg6[%c0_10, %c0_11] : memref<8x16xf32, #tpu.memory_space<vmem>>, vector<8x16xf32>
    %cst_12 = arith.constant dense<0.000000e+00> : vector<128x16xf32>
    %8 = tpu.matmul %6, %7, %cst_12 {dimension_numbers = #tpu.dot_dimension_numbers<[1], [0], [0], [1], [0, 0, 1, 1], [], []>} : vector<128x8xf32>, vector<8x16xf32>, vector<128x16xf32> -> vector<128x16xf32>
    %9 = arith.addf %2, %5 : vector<128x16xf32>
    %10 = arith.addf %9, %8 : vector<128x16xf32>
    %c0_13 = arith.constant 0 : index
    %c0_14 = arith.constant 0 : index
    %11 = vector.load %arg7[%c0_13, %c0_14] : memref<1x16xf32, #tpu.memory_space<vmem>>, vector<1x16xf32>
    %12 = vector.broadcast %11 : vector<1x16xf32> to vector<128x16xf32>
    %13 = arith.addf %10, %12 : vector<128x16xf32>
    %cst_15 = arith.constant 5.000000e-01 : f32
    %14 = vector.broadcast %cst_15 : f32 to vector<128x16xf32>
    %15 = arith.mulf %14, %13 : vector<128x16xf32>
    %16 = math.tanh %15 : vector<128x16xf32>
    %cst_16 = arith.constant 1.000000e+00 : f32
    %17 = vector.broadcast %cst_16 : f32 to vector<128x16xf32>
    %18 = arith.addf %16, %17 : vector<128x16xf32>
    %cst_17 = arith.constant 5.000000e-01 : f32
    %19 = vector.broadcast %cst_17 : f32 to vector<128x16xf32>
    %20 = arith.mulf %19, %18 : vector<128x16xf32>
    %21 = math.absf %20 : vector<128x16xf32>
    %cst_18 = arith.constant dense<0.000000e+00> : vector<128xf32>
    %22 = vector.multi_reduction <add>, %21, %cst_18 [1] : vector<128x16xf32> to vector<128xf32>
    %23 = vector.shape_cast %22 : vector<128xf32> to vector<128x1xf32>
    %cst_19 = arith.constant 9.99999996E-13 : f32
    %24 = vector.broadcast %cst_19 : f32 to vector<128x1xf32>
    %25 = arith.maximumf %23, %24 : vector<128x1xf32>
    %26 = tpu.reciprocal %25 : vector<128x1xf32> -> vector<128x1xf32>
    %27 = vector.broadcast %26 : vector<128x1xf32> to vector<128x16xf32>
    %28 = arith.mulf %20, %27 : vector<128x16xf32>
    %c0_20 = arith.constant 0 : index
    %c0_21 = arith.constant 0 : index
    %29 = vector.load %arg8[%c0_20, %c0_21] : memref<128x16xf32, #tpu.memory_space<vmem>>, vector<128x16xf32>
    tpu.vector_store %arg8[%c0_20, %c0_21], %28 {strides = array<i32>} : memref<128x16xf32, #tpu.memory_space<vmem>>, vector<128x16xf32>,
    return
  }
  func.func @transform_0(%arg0: i32) -> (i32, i32) {
    %c0_i32 = arith.constant 0 : i32
    %c0_i32_0 = arith.constant 0 : i32
    return %arg0, %c0_i32 : i32, i32
  }
  func.func @transform_1(%arg0: i32) -> (i32, i32) {
    %c0_i32 = arith.constant 0 : i32
    %c0_i32_0 = arith.constant 0 : i32
    return %arg0, %c0_i32 : i32, i32
  }
  func.func @transform_2(%arg0: i32) -> (i32, i32) {
    %c0_i32 = arith.constant 0 : i32
    %c0_i32_0 = arith.constant 0 : i32
    return %arg0, %c0_i32 : i32, i32
  }
  func.func @transform_3(%arg0: i32) -> (i32, i32) {
    %c0_i32 = arith.constant 0 : i32
    %c0_i32_0 = arith.constant 0 : i32
    %c0_i32_1 = arith.constant 0 : i32
    return %c0_i32, %c0_i32_0 : i32, i32
  }
  func.func @transform_4(%arg0: i32) -> (i32, i32) {
    %c0_i32 = arith.constant 0 : i32
    %c0_i32_0 = arith.constant 0 : i32
    %c0_i32_1 = arith.constant 0 : i32
    return %c0_i32, %c0_i32_0 : i32, i32
  }
  func.func @transform_5(%arg0: i32) -> (i32, i32) {
    %c0_i32 = arith.constant 0 : i32
    %c0_i32_0 = arith.constant 0 : i32
    %c0_i32_1 = arith.constant 0 : i32
    return %c0_i32, %c0_i32_0 : i32, i32
  }
  func.func @transform_6(%arg0: i32) -> (i32, i32) {
    %c0_i32 = arith.constant 0 : i32
    %c0_i32_0 = arith.constant 0 : i32
    %c0_i32_1 = arith.constant 0 : i32
    return %c0_i32, %c0_i32_0 : i32, i32
  }
  func.func @transform_7(%arg0: i32) -> (i32, i32) {
    %c0_i32 = arith.constant 0 : i32
    %c0_i32_0 = arith.constant 0 : i32
    return %arg0, %c0_i32 : i32, i32
  }
}

</mosaic_0001>

<bundles_post_ra>
// kernel: tpu_custom_call.1
= control target key start
LH: loop header
LB: loop body
LE: loop exit
PB: predicated region body
PF: predicated region fallthrough
CT: control target
= control target key end

     0   :  { %s1588_s24 = smov 0   ;;  %s1890_s0 = inlined_call_operand.vmem [shape: f32[256,16], index: 0, kind: input, shape index: {}]   ;;  %s1891_s1 = inlined_call_operand.vmem [shape: f32[256,8], index: 1, kind: input, shape index: {}]   ;;  %s1892_s2 = inlined_call_operand.vmem [shape: f32[256,8], index: 2, kind: input, shape index: {}]   ;;  %s1893_s3 = inlined_call_operand.vmem [shape: f32[16,16], index: 3, kind: input, shape index: {}]   ;;  %s1894_s4 = inlined_call_operand.vmem [shape: f32[8,16], index: 4, kind: input, shape index: {}]   ;;  %s1895_s5 = inlined_call_operand.vmem [shape: f32[8,16], index: 5, kind: input, shape index: {}]   ;;  %s1896_s6 = inlined_call_operand.vmem [shape: f32[1,16], index: 6, kind: input, shape index: {}]   ;;  %s1897_s7 = inlined_call_operand.vmem [shape: f32[256,16], index: 7, kind: output, shape index: {}]  }
   0x1 LB: > { %s1270_s25 = sadd.s32 4294967295, %s1546_s24   ;;  %p1274_p0 = scmp.ge.s32.totalorder %s1546_s24, 1  ;;  %s1546_s24 = sphi %s1588_s24, %s17_s24  }
   0x2   : > { %p260_p1 = scmp.lt.s32.totalorder %s1546_s24, 3 }
   0x4   : > { %p261_p2 = pnand %p1274_p0, %p260_p1 }
   0x5   : > { %s1275_s28 = sshll.u32 (!%p261_p2), %s1270_s25, 4 }
   0x6   : > { %264 = sbr.rel (%p261_p2) target bundleno = 444 (0x1bc), region = 48  ;;  %p303_p3 = scmp.lt.s32.totalorder (!%p261_p2), %s1275_s28, 31 }
   0xb   : > { %v360_v0 = vld [vmem:[%s1894_s4] sm:$0xff]  ;;  %v343_v1 = vld [vmem:[%s1893_s3 + $0x8] sm:$0xff]  ;;  %s1899_s28 = smov (!%p303_p3, %s1275_s28), 31  ;;  %vm361_vm0 = vcmask 64512   ;;  %vm765_vm1 = vcmask 130048  }
   0xc   : > { %v571_v2 = vld [vmem:[%s1895_s5] sm:$0xff]  ;;  %1386 = vmatprep.subr.mxu0 %v360_v0  ;;  %1466 = vmatprep.subr.mxu1 %v360_v0  ;;  %s1605_s10 = sshll.u32 %s1899_s28, 3 }
   0xd   : > { %1387 = vmatpush3.msra.mxu0 %v360_v0  ;;  %1467 = vmatpush3.msra.mxu1 %v360_v0  ;;  %s1611_s13 = scalar_lea.vmem %s1891_s1, %s1605_s10  ;;  %v342_v9 = vld [vmem:[%s1893_s3] sm:$0xff]  ;;  %s1644_s18 = scalar_lea.vmem %s1892_s2, %s1605_s10 }
   0xe   : > { %1438 = vmatprep.subr.mxu0 %v343_v1  ;;  %1412 = vmatprep.subr.mxu1 %v571_v2  ;;  %v344_v3 = vld [vmem:[%s1611_s13] sm:$0xff]  ;;  %v345_v5 = vld [vmem:[%s1611_s13 + $0x8] sm:$0xff]  ;;  %v346_v7 = vld [vmem:[%s1611_s13 + $0x10] sm:$0xff]  ;;  %s1650_s21 = scalar_lea.vmem %s1890_s0, %s1605_s10  ;;  %s1837_s27 = scalar_lea.vmem %s1897_s7, %s1605_s10 }
   0xf   : > { %v352_v4 = vld [vmem:[%s1611_s13 + $0x40] sm:$0xff]  ;;  %1388 = vmatprep.mubr.msk.f32.mxu0 %vm361_vm0, %v344_v3  ;;  %v353_v6 = vld [vmem:[%s1611_s13 + $0x48] sm:$0xff]  ;;  %v354_v8 = vld [vmem:[%s1611_s13 + $0x50] sm:$0xff] }
  0x10   : > { %1400 = vmatprep.mubr.msk.f32.mxu1 %vm361_vm0, %v352_v4  ;;  %1389 = vmatmul.mubr.msk.f32.vlgmr.msra.gmra.mxu0 %vm361_vm0, %v345_v5  ;;  %v347_v10 = vld [vmem:[%s1611_s13 + $0x18] sm:$0xff]  ;;  %v348_v12 = vld [vmem:[%s1611_s13 + $0x20] sm:$0xff]  ;;  %v349_v14 = vld [vmem:[%s1611_s13 + $0x28] sm:$0xff] }
  0x11   : > { %1401 = vmatmul.mubr.msk.f32.vlgmr.msra.gmra.mxu1 %vm361_vm0, %v353_v6  ;;  %1439 = vmatpush3.msra.mxu0 %v343_v1  ;;  %v355_v11 = vld [vmem:[%s1611_s13 + $0x58] sm:$0xff]  ;;  %v356_v13 = vld [vmem:[%s1611_s13 + $0x60] sm:$0xff]  ;;  %v357_v15 = vld [vmem:[%s1611_s13 + $0x68] sm:$0xff] }
  0x12   : > { %1413 = vmatpush3.msra.mxu1 %v571_v2  ;;  %1391 = vmatprep.mubr.msk.f32.mxu0 %vm361_vm0, %v346_v7  ;;  %v350_v16 = vld [vmem:[%s1611_s13 + $0x30] sm:$0xff]  ;;  %v351_v18 = vld [vmem:[%s1611_s13 + $0x38] sm:$0xff]  ;;  %v555_v20 = vld [vmem:[%s1644_s18] sm:$0xff] }
  0x13   : > { %1403 = vmatprep.mubr.msk.f32.mxu1 %vm361_vm0, %v354_v8  ;;  %1440 = vmatprep.subr.mxu0 %v342_v9  ;;  %v358_v17 = vld [vmem:[%s1611_s13 + $0x70] sm:$0xff]  ;;  %v359_v19 = vld [vmem:[%s1611_s13 + $0x78] sm:$0xff]  ;;  %v326_v21 = vld [vmem:[%s1650_s21] sm:$0xff] }
  0x14   : > { %1392 = vmatmul.mubr.msk.f32.gmra.mxu0 %vm361_vm0, %v347_v10  ;;  %v556_v22 = vld [vmem:[%s1644_s18 + $0x8] sm:$0xff]  ;;  %v557_v24 = vld [vmem:[%s1644_s18 + $0x10] sm:$0xff]  ;;  %v558_v26 = vld [vmem:[%s1644_s18 + $0x18] sm:$0xff] }
  0x15   : > { %1404 = vmatmul.mubr.msk.f32.gmra.mxu1 %vm361_vm0, %v355_v11  ;;  %1394 = vmatprep.mubr.msk.f32.mxu0 %vm361_vm0, %v348_v12  ;;  %v327_v23 = vld [vmem:[%s1650_s21 + $0x8] sm:$0xff]  ;;  %v328_v25 = vld [vmem:[%s1650_s21 + $0x10] sm:$0xff]  ;;  %v329_v27 = vld [vmem:[%s1650_s21 + $0x18] sm:$0xff] }
  0x16   : > { %1406 = vmatprep.mubr.msk.f32.mxu1 %vm361_vm0, %v356_v13  ;;  %1441 = vmatpush3.msra.mxu0 %v342_v9  ;;  %v330_v28 = vld [vmem:[%s1650_s21 + $0x20] sm:$0xff]  ;;  %v331_v30 = vld [vmem:[%s1650_s21 + $0x28] sm:$0xff]  ;;  %v332_v32 = vld [vmem:[%s1650_s21 + $0x30] sm:$0xff] }
  0x17   : > { %v559_v29 = vld [vmem:[%s1644_s18 + $0x20] sm:$0xff]  ;;  %v560_v31 = vld [vmem:[%s1644_s18 + $0x28] sm:$0xff]  ;;  %v561_v33 = vld [vmem:[%s1644_s18 + $0x30] sm:$0xff] }
  0x18   : > { %1395 = vmatmul.mubr.msk.f32.gmra.mxu0 %vm361_vm0, %v349_v14  ;;  %v333_v34 = vld [vmem:[%s1650_s21 + $0x38] sm:$0xff]  ;;  %v334_v36 = vld [vmem:[%s1650_s21 + $0x40] sm:$0xff]  ;;  %v335_v38 = vld [vmem:[%s1650_s21 + $0x48] sm:$0xff] }
  0x19   : > { %1407 = vmatmul.mubr.msk.f32.gmra.mxu1 %vm361_vm0, %v357_v15  ;;  %1397 = vmatprep.mubr.msk.f32.mxu0 %vm361_vm0, %v350_v16  ;;  %v562_v35 = vld [vmem:[%s1644_s18 + $0x38] sm:$0xff]  ;;  %v563_v37 = vld [vmem:[%s1644_s18 + $0x40] sm:$0xff]  ;;  %v564_v39 = vld [vmem:[%s1644_s18 + $0x48] sm:$0xff] }
  0x1a   : > { %1409 = vmatprep.mubr.msk.f32.mxu1 %vm361_vm0, %v358_v17  ;;  %v336_v40 = vld [vmem:[%s1650_s21 + $0x50] sm:$0xff]  ;;  %v337_v42 = vld [vmem:[%s1650_s21 + $0x58] sm:$0xff]  ;;  %v338_v44 = vld [vmem:[%s1650_s21 + $0x60] sm:$0xff] }
  0x1b   : > { %v565_v41 = vld [vmem:[%s1644_s18 + $0x50] sm:$0xff]  ;;  %v566_v43 = vld [vmem:[%s1644_s18 + $0x58] sm:$0xff]  ;;  %v567_v45 = vld [vmem:[%s1644_s18 + $0x60] sm:$0xff] }
  0x1c   : > { %1398 = vmatmul.mubr.msk.f32.gmra.mxu0 %vm361_vm0, %v351_v18  ;;  %v339_v46 = vld [vmem:[%s1650_s21 + $0x68] sm:$0xff]  ;;  %v340_v48 = vld [vmem:[%s1650_s21 + $0x70] sm:$0xff]  ;;  %v341_v50 = vld [vmem:[%s1650_s21 + $0x78] sm:$0xff] }
  0x1d   : > { %1410 = vmatmul.mubr.msk.f32.gmra.mxu1 %vm361_vm0, %v359_v19  ;;  %1442 = vmatprep.mubr.msk.f32.mxu0 %vm765_vm1, %v326_v21  ;;  %v568_v47 = vld [vmem:[%s1644_s18 + $0x68] sm:$0xff]  ;;  %v569_v49 = vld [vmem:[%s1644_s18 + $0x70] sm:$0xff]  ;;  %v570_v51 = vld [vmem:[%s1644_s18 + $0x78] sm:$0xff] }
  0x1e   : > { %1414 = vmatprep.mubr.msk.f32.mxu1 %vm361_vm0, %v555_v20  ;;  %v1743_v7 = vld [vmem:[%s1896_s6] ss:$0 sm:$0xff] }
  0x20   : > { %1443 = vmatmul.mubr.msk.f32.vlgmr.msra.gmra.mxu0 %vm765_vm1, %v327_v23 }
  0x21   : > { %1415 = vmatmul.mubr.msk.f32.vlgmr.msra.gmra.mxu1 %vm361_vm0, %v556_v22  ;;  %1445 = vmatprep.mubr.msk.f32.mxu0 %vm765_vm1, %v328_v25 }
  0x22   : > { %1417 = vmatprep.mubr.msk.f32.mxu1 %vm361_vm0, %v557_v24 }
  0x24   : > { %1446 = vmatmul.mubr.msk.f32.gmra.mxu0 %vm765_vm1, %v329_v27 }
  0x25   : > { %1418 = vmatmul.mubr.msk.f32.gmra.mxu1 %vm361_vm0, %v558_v26  ;;  %1448 = vmatprep.mubr.msk.f32.mxu0 %vm765_vm1, %v330_v28 }
  0x26   : > { %1420 = vmatprep.mubr.msk.f32.mxu1 %vm361_vm0, %v559_v29 }
  0x28   : > { %1449 = vmatmul.mubr.msk.f32.gmra.mxu0 %vm765_vm1, %v331_v30 }
  0x29   : > { %1421 = vmatmul.mubr.msk.f32.gmra.mxu1 %vm361_vm0, %v560_v31  ;;  %1451 = vmatprep.mubr.msk.f32.mxu0 %vm765_vm1, %v332_v32 }
  0x2a   : > { %1423 = vmatprep.mubr.msk.f32.mxu1 %vm361_vm0, %v561_v33 }
  0x2c   : > { %1452 = vmatmul.mubr.msk.f32.gmra.mxu0 %vm765_vm1, %v333_v34 }
  0x2d   : > { %1424 = vmatmul.mubr.msk.f32.gmra.mxu1 %vm361_vm0, %v562_v35  ;;  %1454 = vmatprep.mubr.msk.f32.mxu0 %vm765_vm1, %v334_v36 }
  0x2e   : > { %1426 = vmatprep.mubr.msk.f32.mxu1 %vm361_vm0, %v563_v37 }
  0x30   : > { %1455 = vmatmul.mubr.msk.f32.gmra.mxu0 %vm765_vm1, %v335_v38 }
  0x31   : > { %1427 = vmatmul.mubr.msk.f32.gmra.mxu1 %vm361_vm0, %v564_v39  ;;  %1457 = vmatprep.mubr.msk.f32.mxu0 %vm765_vm1, %v336_v40 }
  0x32   : > { %1429 = vmatprep.mubr.msk.f32.mxu1 %vm361_vm0, %v565_v41 }
  0x34   : > { %1458 = vmatmul.mubr.msk.f32.gmra.mxu0 %vm765_vm1, %v337_v42 }
  0x35   : > { %1430 = vmatmul.mubr.msk.f32.gmra.mxu1 %vm361_vm0, %v566_v43  ;;  %1460 = vmatprep.mubr.msk.f32.mxu0 %vm765_vm1, %v338_v44 }
  0x36   : > { %1432 = vmatprep.mubr.msk.f32.mxu1 %vm361_vm0, %v567_v45 }
  0x38   : > { %1461 = vmatmul.mubr.msk.f32.gmra.mxu0 %vm765_vm1, %v339_v46 }
  0x39   : > { %1433 = vmatmul.mubr.msk.f32.gmra.mxu1 %vm361_vm0, %v568_v47  ;;  %1463 = vmatprep.mubr.msk.f32.mxu0 %vm765_vm1, %v340_v48 }
  0x3a   : > { %1435 = vmatprep.mubr.msk.f32.mxu1 %vm361_vm0, %v569_v49 }
  0x3c   : > { %1464 = vmatmul.mubr.msk.f32.gmra.mxu0 %vm765_vm1, %v341_v50 }
  0x3d   : > { %1436 = vmatmul.mubr.msk.f32.gmra.mxu1 %vm361_vm0, %v570_v51 }
  0xd0   : > { %v1390_v52 = vpop.f32.mrf.mxu0 }
  0xd1   : > { %v1724_v53 = vpop.f32.mrf.mxu1 }
  0xd2   : > { %v476_v54 = vpop.f32.mrf.mxu0 }
  0xd3   : > { %v1726_v55 = vpop.f32.mrf.mxu1 }
  0xd4   : > { %v1393_v56 = vpop.f32.mrf.mxu0 }
  0xd5   : > { %v1728_v57 = vpop.f32.mrf.mxu1 }
  0xd6   : > { %v486_v58 = vpop.f32.mrf.mxu0 }
  0xd7   : > { %v1730_v59 = vpop.f32.mrf.mxu1 }
  0xd8   : > { %v1396_v60 = vpop.f32.mrf.mxu0 }
  0xd9   : > { %v1732_v61 = vpop.f32.mrf.mxu1 }
  0xda   : > { %v496_v62 = vpop.f32.mrf.mxu0 }
  0xdb   : > { %v1734_v63 = vpop.f32.mrf.mxu1 }
  0xdc   : > { %v1399_v0 = vpop.f32.mrf.mxu0 }
  0xdd   : > { %v1736_v1 = vpop.f32.mrf.mxu1 }
  0xde   : > { %v506_v2 = vpop.f32.mrf.mxu0 }
  0xdf   : > { %v1738_v3 = vpop.f32.mrf.mxu1 }
  0xe0   : > { %v1444_v5 = vpop.f32.mrf.mxu0 }
  0xe1   : > { %v1416_v4 = vpop.f32.mrf.mxu1  ;;  %v886_v6 = vadd.f32 %v1444_v5, %v1390_v52 }
  0xe2   : > { %v880_v9 = vpop.f32.mrf.mxu0 }
  0xe3   : > { %v686_v8 = vpop.f32.mrf.mxu1  ;;  %v960_v10 = vadd.f32 %v1416_v4, %v886_v6  ;;  %v881_v11 = vadd.f32 %v880_v9, %v476_v54 }
  0xe4   : > { %v1447_v13 = vpop.f32.mrf.mxu0 }
  0xe5   : > { %v1419_v12 = vpop.f32.mrf.mxu1  ;;  %v983_v14 = vadd.f32 %v1743_v7, %v960_v10  ;;  %v959_v15 = vadd.f32 %v881_v11, %v686_v8  ;;  %v896_v16 = vadd.f32 %v1447_v13, %v1393_v56 }
  0xe6   : > { %v890_v18 = vpop.f32.mrf.mxu0 }
  0xe7   : > { %v696_v17 = vpop.f32.mrf.mxu1  ;;  %v999_v19 = vmul.f32 0.5, %v983_v14  ;;  %v982_v20 = vadd.f32 %v1743_v7, %v959_v15  ;;  %v962_v21 = vadd.f32 %v1419_v12, %v896_v16  ;;  %v891_v22 = vadd.f32 %v890_v18, %v486_v58 }
  0xe8   : > { %v1450_v23 = vpop.f32.mrf.mxu0 }
  0xe9   : > { %v1422_v24 = vpop.f32.mrf.mxu1  ;;  %1476 = vtanh.f32 %v999_v19  ;;  %v998_v25 = vmul.f32 0.5, %v982_v20  ;;  %v985_v26 = vadd.f32 %v1743_v7, %v962_v21  ;;  %v961_v27 = vadd.f32 %v891_v22, %v696_v17 }
  0xea   : > { %v906_v28 = vadd.f32 %v1450_v23, %v1396_v60  ;;  %v900_v29 = vpop.f32.mrf.mxu0 }
  0xeb   : > { %v706_v30 = vpop.f32.mrf.mxu1  ;;  %1478 = vtanh.f32 %v998_v25  ;;  %v1001_v31 = vmul.f32 0.5, %v985_v26  ;;  %v984_v32 = vadd.f32 %v1743_v7, %v961_v27  ;;  %v901_v33 = vadd.f32 %v900_v29, %v496_v62 }
  0xec   : > { %v964_v34 = vadd.f32 %v1422_v24, %v906_v28  ;;  %v1453_v35 = vpop.f32.mrf.mxu0 }
  0xed   : > { %v1425_v36 = vpop.f32.mrf.mxu1  ;;  %1480 = vtanh.f32 %v1001_v31  ;;  %v1000_v37 = vmul.f32 0.5, %v984_v32  ;;  %v963_v38 = vadd.f32 %v901_v33, %v706_v30  ;;  %v916_v39 = vadd.f32 %v1453_v35, %v1399_v0 }
  0xee   : > { %v987_v40 = vadd.f32 %v1743_v7, %v964_v34  ;;  %v910_v41 = vpop.f32.mrf.mxu0 }
  0xef   : > { %v716_v42 = vpop.f32.mrf.mxu1  ;;  %v986_v43 = vadd.f32 %v1743_v7, %v963_v38  ;;  %v966_v44 = vadd.f32 %v1425_v36, %v916_v39  ;;  %v911_v45 = vadd.f32 %v910_v41, %v506_v2  ;;  %1482 = vtanh.f32 %v1000_v37 }
  0xf0   : > { %v1003_v46 = vmul.f32 0.5, %v987_v40  ;;  %v1456_v47 = vpop.f32.mrf.mxu0 }
  0xf1   : > { %v1428_v48 = vpop.f32.mrf.mxu1  ;;  %v1002_v49 = vmul.f32 0.5, %v986_v43  ;;  %v989_v50 = vadd.f32 %v1743_v7, %v966_v44  ;;  %v965_v51 = vadd.f32 %v911_v45, %v716_v42  ;;  %v926_v52 = vadd.f32 %v1456_v47, %v1724_v53 }
  0xf2   : > { %1484 = vtanh.f32 %v1003_v46  ;;  %v920_v54 = vpop.f32.mrf.mxu0 }
  0xf3   : > { %v726_v56 = vpop.f32.mrf.mxu1  ;;  %1486 = vtanh.f32 %v1002_v49  ;;  %v1005_v58 = vmul.f32 0.5, %v989_v50  ;;  %v988_v60 = vadd.f32 %v1743_v7, %v965_v51  ;;  %v968_v62 = vadd.f32 %v1428_v48, %v926_v52 }
  0xf4   : > { %v921_v0 = vadd.f32 %v920_v54, %v1726_v55  ;;  %v1459_v2 = vpop.f32.mrf.mxu0 }
  0xf5   : > { %v1431_v4 = vpop.f32.mrf.mxu1  ;;  %1488 = vtanh.f32 %v1005_v58  ;;  %v1004_v5 = vmul.f32 0.5, %v988_v60  ;;  %v991_v6 = vadd.f32 %v1743_v7, %v968_v62  ;;  %v936_v8 = vadd.f32 %v1459_v2, %v1728_v57 }
  0xf6   : > { %v1477_v9 = vpop.eup %1476  ;;  %v967_v53 = vadd.f32 %v921_v0, %v726_v56  ;;  %v930_v10 = vpop.f32.mrf.mxu0 }
  0xf7   : > { %v736_v11 = vpop.f32.mrf.mxu1  ;;  %1490 = vtanh.f32 %v1004_v5  ;;  %v1007_v12 = vmul.f32 0.5, %v991_v6  ;;  %v970_v13 = vadd.f32 %v1431_v4, %v936_v8  ;;  %v931_v14 = vadd.f32 %v930_v10, %v1730_v59 }
  0xf8   : > { %v1479_v15 = vpop.eup %1478  ;;  %v990_v55 = vadd.f32 %v1743_v7, %v967_v53  ;;  %v1462_v16 = vpop.f32.mrf.mxu0  ;;  %v1031_v18 = vadd.f32 1.0, %v1477_v9 }
  0xf9   : > { %v1434_v17 = vpop.f32.mrf.mxu1  ;;  %1492 = vtanh.f32 %v1007_v12  ;;  %v993_v19 = vadd.f32 %v1743_v7, %v970_v13  ;;  %v969_v20 = vadd.f32 %v931_v14, %v736_v11  ;;  %v946_v57 = vadd.f32 %v1462_v16, %v1732_v61 }
  0xfa   : > { %v1481_v21 = vpop.eup %1480  ;;  %v1006_v22 = vmul.f32 0.5, %v990_v55  ;;  %v940_v23 = vpop.f32.mrf.mxu0  ;;  %v1761_v25 = vmul.f32 0.5, %v1031_v18  ;;  %v1030_v26 = vadd.f32 1.0, %v1479_v15 }
  0xfb   : > { %v746_v24 = vpop.f32.mrf.mxu1  ;;  %v1009_v59 = vmul.f32 0.5, %v993_v19  ;;  %v992_v27 = vadd.f32 %v1743_v7, %v969_v20  ;;  %v972_v28 = vadd.f32 %v1434_v17, %v946_v57  ;;  %v941_v29 = vadd.f32 %v940_v23, %v1734_v63 }
  0xfc   : > { %1494 = vtanh.f32 %v1006_v22  ;;  %v1465_v30 = vpop.f32.mrf.mxu0  ;;  %v1063_v32 = vand.u32 2147483647, %v1761_v25  ;;  %v1033_v33 = vadd.f32 1.0, %v1481_v21  ;;  %v1766_v61 = vmul.f32 0.5, %v1030_v26  ;;  %v1483_v34 = vpop.eup %1482 }
  0xfd   : > { %v1437_v31 = vpop.f32.mrf.mxu1  ;;  %1496 = vtanh.f32 %v1009_v59  ;;  %v1008_v35 = vmul.f32 0.5, %v992_v27  ;;  %v995_v36 = vadd.f32 %v1743_v7, %v972_v28  ;;  %v971_v37 = vadd.f32 %v941_v29, %v746_v24 }
  0xfe   : > { %v956_v38 = vadd.f32 %v1465_v30, %v1736_v1  ;;  %v1081_v39 = vsel %vm765_vm1, %v1063_v32, 0.0  ;;  %v950_v40 = vpop.f32.mrf.mxu0  ;;  %v1771_v41 = vmul.f32 0.5, %v1033_v33  ;;  %v1062_v42 = vand.u32 2147483647, %v1766_v61 }
  0xff   : > { %v756_v63 = vpop.f32.mrf.mxu1  ;;  %v1485_v43 = vpop.eup %1484  ;;  %1498 = vtanh.f32 %v1008_v35  ;;  %v1011_v44 = vmul.f32 0.5, %v995_v36  ;;  %v994_v45 = vadd.f32 %v1743_v7, %v971_v37  ;;  %1082 = vadd.xlane.f32.xlu0 %v1081_v39  ;;  %v951_v46 = vadd.f32 %v950_v40, %v1738_v3 }
 0x100   : > { %v1487_v47 = vpop.eup %1486  ;;  %v974_v48 = vadd.f32 %v1437_v31, %v956_v38  ;;  %v1065_v1 = vand.u32 2147483647, %v1771_v41  ;;  %v1078_v49 = vsel %vm765_vm1, %v1062_v42, 0.0  ;;  %v1032_v50 = vadd.f32 1.0, %v1483_v34 }
 0x101   : > { %1500 = vtanh.f32 %v1011_v44  ;;  %v1010_v51 = vmul.f32 0.5, %v994_v45  ;;  %v973_v52 = vadd.f32 %v951_v46, %v756_v63  ;;  %v1034_v54 = vadd.f32 1.0, %v1487_v47 }
 0x102   : > { %v1489_v56 = vpop.eup %1488  ;;  %v997_v58 = vadd.f32 %v1743_v7, %v974_v48  ;;  %v1087_v60 = vsel %vm765_vm1, %v1065_v1, 0.0  ;;  %v1780_v62 = vmul.f32 0.5, %v1032_v50  ;;  %v1035_v0 = vadd.f32 1.0, %v1485_v43 }
 0x103   : > { %1502 = vtanh.f32 %v1010_v51  ;;  %v996_v3 = vadd.f32 %v1743_v7, %v973_v52  ;;  %1088 = vadd.xlane.f32.xlu1 %v1087_v60  ;;  %1079 = vadd.xlane.f32.xlu0 %v1078_v49  ;;  %v1783_v2 = vmul.f32 0.5, %v1034_v54  ;;  %v1037_v4 = vadd.f32 1.0, %v1489_v56 }
 0x104   : > { %v1491_v5 = vpop.eup %1490  ;;  %v1013_v6 = vmul.f32 0.5, %v997_v58  ;;  %v1064_v8 = vand.u32 2147483647, %v1780_v62  ;;  %v1786_v9 = vmul.f32 0.5, %v1035_v0 }
 0x105   : > { %v1012_v53 = vmul.f32 0.5, %v996_v3  ;;  %v1066_v10 = vand.u32 2147483647, %v1783_v2  ;;  %v1036_v11 = vadd.f32 1.0, %v1491_v5  ;;  %v1791_v14 = vmul.f32 0.5, %v1037_v4 }
 0x106   : > { %v1493_v12 = vpop.eup %1492  ;;  %1504 = vtanh.f32 %v1013_v6  ;;  %v1084_v13 = vsel %vm765_vm1, %v1064_v8, 0.0  ;;  %v1067_v7 = vand.u32 2147483647, %v1786_v9 }
 0x107   : > { %1506 = vtanh.f32 %v1012_v53  ;;  %1085 = vadd.xlane.f32.xlu1 %v1084_v13  ;;  %v1090_v15 = vsel %vm765_vm1, %v1066_v10, 0.0  ;;  %v1794_v55 = vmul.f32 0.5, %v1036_v11  ;;  %v1039_v16 = vadd.f32 1.0, %v1493_v12 }
 0x108   : > { %1091 = vadd.xlane.f32.xlu0 %v1090_v15  ;;  %v1093_v20 = vsel %vm765_vm1, %v1067_v7, 0.0  ;;  %v1069_v57 = vand.u32 2147483647, %v1791_v14 }
 0x109   : > { %v1495_v17 = vpop.eup %1494  ;;  %v1068_v18 = vand.u32 2147483647, %v1794_v55  ;;  %v1799_v22 = vmul.f32 0.5, %v1039_v16 }
 0x10a   : > { %v1497_v19 = vpop.eup %1496  ;;  %v1038_v21 = vadd.f32 1.0, %v1495_v17  ;;  %v1099_v29 = vsel %vm765_vm1, %v1069_v57, 0.0 }
 0x10b   : > { %1094 = vadd.xlane.f32.xlu1 %v1093_v20  ;;  %v1096_v23 = vsel %vm765_vm1, %v1068_v18, 0.0  ;;  %v1041_v24 = vadd.f32 1.0, %v1497_v19  ;;  %v1071_v31 = vand.u32 2147483647, %v1799_v22 }
 0x10c   : > { %v1499_v26 = vpop.eup %1498  ;;  %1097 = vadd.xlane.f32.xlu0 %v1096_v23  ;;  %v1802_v59 = vmul.f32 0.5, %v1038_v21 }
 0x10d   : > { %v1040_v27 = vadd.f32 1.0, %v1499_v26  ;;  %v1807_v32 = vmul.f32 0.5, %v1041_v24  ;;  %v1105_v39 = vsel %vm765_vm1, %v1071_v31, 0.0 }
 0x10e   : > { %v1501_v28 = vpop.eup %1500  ;;  %v1070_v30 = vand.u32 2147483647, %v1802_v59 }
 0x10f   : > { %1100 = vadd.xlane.f32.xlu1 %v1099_v29  ;;  %v1809_v33 = vmul.f32 0.5, %v1040_v27  ;;  %v1043_v34 = vadd.f32 1.0, %v1501_v28  ;;  %v1073_v40 = vand.u32 2147483647, %v1807_v32 }
 0x110   : > { %v1503_v35 = vpop.eup %1502  ;;  %v1102_v36 = vsel %vm765_vm1, %v1070_v30, 0.0 }
 0x111   : > { %1103 = vadd.xlane.f32.xlu0 %v1102_v36  ;;  %v1072_v37 = vand.u32 2147483647, %v1809_v33  ;;  %v1042_v38 = vadd.f32 1.0, %v1503_v35  ;;  %v1815_v63 = vmul.f32 0.5, %v1043_v34  ;;  %v1111_v1 = vsel %vm765_vm1, %v1073_v40, 0.0 }
 0x113   : > { %v1505_v42 = vpop.eup %1504  ;;  %1106 = vadd.xlane.f32.xlu1 %v1105_v39  ;;  %v1108_v43 = vsel %vm765_vm1, %v1072_v37, 0.0  ;;  %v1818_v44 = vmul.f32 0.5, %v1042_v38  ;;  %v1075_v49 = vand.u32 2147483647, %v1815_v63 }
 0x114   : > { %v1507_v45 = vpop.eup %1506  ;;  %v1045_v46 = vadd.f32 1.0, %v1505_v42 }
 0x115   : > { %1109 = vadd.xlane.f32.xlu0 %v1108_v43  ;;  %v1074_v47 = vand.u32 2147483647, %v1818_v44  ;;  %v1044_v48 = vadd.f32 1.0, %v1507_v45  ;;  %v1117_v56 = vsel %vm765_vm1, %v1075_v49, 0.0 }
 0x116   : > { %v1823_v50 = vmul.f32 0.5, %v1045_v46 }
 0x117   : > { %1112 = vadd.xlane.f32.xlu1 %v1111_v1  ;;  %v1114_v51 = vsel %vm765_vm1, %v1074_v47, 0.0  ;;  %v1826_v52 = vmul.f32 0.5, %v1044_v48 }
 0x118   : > { %v1077_v58 = vand.u32 2147483647, %v1823_v50 }
 0x119   : > { %1115 = vadd.xlane.f32.xlu0 %v1114_v51  ;;  %v1076_v54 = vand.u32 2147483647, %v1826_v52 }
 0x11a   : > { %v1123_v0 = vsel %vm765_vm1, %v1077_v58, 0.0 }
 0x11b   : > { %1118 = vadd.xlane.f32.xlu1 %v1117_v56  ;;  %v1120_v60 = vsel %vm765_vm1, %v1076_v54, 0.0 }
 0x11d   : > { %1121 = vadd.xlane.f32.xlu0 %v1120_v60 }
 0x11f   : > { %1124 = vadd.xlane.f32.xlu1 %v1123_v0 }
 0x188   : > { %v1083_v3 = vpop.xlane.xlu0 %1082 }
 0x189   : > { %v1127_v4 = vmax.f32 %v1083_v3, 1e-12 }
 0x18b   : > { %1508 = vrcp.f32 %v1127_v4 }
 0x18c   : > { %v1089_v5 = vpop.xlane.xlu1 %1088  ;;  %v1080_v6 = vpop.xlane.xlu0 %1079 }
 0x18d   : > { %v1129_v8 = vmax.f32 %v1089_v5, 1e-12  ;;  %v1126_v53 = vmax.f32 %v1080_v6, 1e-12 }
 0x18f   : > { %1510 = vrcp.f32 %v1129_v8 }
 0x190   : > { %1512 = vrcp.f32 %v1126_v53  ;;  %v1086_v10 = vpop.xlane.xlu1 %1085 }
 0x191   : > { %v1128_v11 = vmax.f32 %v1086_v10, 1e-12  ;;  %v1092_v12 = vpop.xlane.xlu0 %1091 }
 0x192   : > { %v1130_v13 = vmax.f32 %v1092_v12, 1e-12 }
 0x193   : > { %1514 = vrcp.f32 %v1128_v11 }
 0x194   : > { %1516 = vrcp.f32 %v1130_v13  ;;  %v1095_v7 = vpop.xlane.xlu1 %1094 }
 0x195   : > { %v1131_v15 = vmax.f32 %v1095_v7, 1e-12  ;;  %v1098_v16 = vpop.xlane.xlu0 %1097 }
 0x196   : > { %v1132_v17 = vmax.f32 %v1098_v16, 1e-12 }
 0x197   : > { %1518 = vrcp.f32 %v1131_v15 }
 0x198   : > { %v1509_v18 = vpop.eup %1508  ;;  %1520 = vrcp.f32 %v1132_v17  ;;  %v1101_v19 = vpop.xlane.xlu1 %1100 }
 0x199   : > { %v1159_v20 = vmul.f32 %v1509_v18, %v1761_v25  ;;  %v1133_v57 = vmax.f32 %v1101_v19, 1e-12 }
 0x19a   : > { %v1104_v21 = vpop.xlane.xlu0 %1103 }
 0x19b   : > { %1175 = vst.msk [vmem:[%s1837_s27 + $0x8] sm:$0xff] %vm765_vm1, %v1159_v20  ;;  %1522 = vrcp.f32 %v1133_v57  ;;  %v1134_v23 = vmax.f32 %v1104_v21, 1e-12 }
 0x19c   : > { %v1511_v24 = vpop.eup %1510  ;;  %v1107_v26 = vpop.xlane.xlu1 %1106 }
 0x19d   : > { %v1513_v27 = vpop.eup %1512  ;;  %v1161_v28 = vmul.f32 %v1511_v24, %v1771_v41  ;;  %1524 = vrcp.f32 %v1134_v23  ;;  %v1135_v29 = vmax.f32 %v1107_v26, 1e-12 }
 0x19e   : > { %v1158_v30 = vmul.f32 %v1513_v27, %v1766_v61  ;;  %v1110_v31 = vpop.xlane.xlu0 %1109 }
 0x19f   : > { %1177 = vst.msk [vmem:[%s1837_s27 + $0x18] sm:$0xff] %vm765_vm1, %v1161_v28  ;;  %1526 = vrcp.f32 %v1135_v29  ;;  %v1136_v25 = vmax.f32 %v1110_v31, 1e-12 }
 0x1a0   : > { %v1515_v34 = vpop.eup %1514  ;;  %1174 = vst.msk [vmem:[%s1837_s27] sm:$0xff] %vm765_vm1, %v1158_v30  ;;  %v1113_v35 = vpop.xlane.xlu1 %1112 }
 0x1a1   : > { %v1517_v36 = vpop.eup %1516  ;;  %v1160_v37 = vmul.f32 %v1515_v34, %v1780_v62  ;;  %1528 = vrcp.f32 %v1136_v25  ;;  %v1137_v41 = vmax.f32 %v1113_v35, 1e-12 }
 0x1a2   : > { %v1162_v38 = vmul.f32 %v1517_v36, %v1783_v2  ;;  %v1116_v39 = vpop.xlane.xlu0 %1115 }
 0x1a3   : > { %1176 = vst.msk [vmem:[%s1837_s27 + $0x10] sm:$0xff] %vm765_vm1, %v1160_v37  ;;  %1530 = vrcp.f32 %v1137_v41  ;;  %v1138_v61 = vmax.f32 %v1116_v39, 1e-12 }
 0x1a4   : > { %v1519_v40 = vpop.eup %1518  ;;  %1178 = vst.msk [vmem:[%s1837_s27 + $0x20] sm:$0xff] %vm765_vm1, %v1162_v38  ;;  %v1119_v42 = vpop.xlane.xlu1 %1118 }
 0x1a5   : > { %v1521_v43 = vpop.eup %1520  ;;  %v1163_v45 = vmul.f32 %v1519_v40, %v1786_v9  ;;  %1532 = vrcp.f32 %v1138_v61  ;;  %v1139_v62 = vmax.f32 %v1119_v42, 1e-12 }
 0x1a6   : > { %v1164_v46 = vmul.f32 %v1521_v43, %v1794_v55  ;;  %v1122_v2 = vpop.xlane.xlu0 %1121 }
 0x1a7   : > { %1179 = vst.msk [vmem:[%s1837_s27 + $0x28] sm:$0xff] %vm765_vm1, %v1163_v45  ;;  %1534 = vrcp.f32 %v1139_v62  ;;  %v1140_v47 = vmax.f32 %v1122_v2, 1e-12 }
 0x1a8   : > { %v1523_v48 = vpop.eup %1522  ;;  %1180 = vst.msk [vmem:[%s1837_s27 + $0x30] sm:$0xff] %vm765_vm1, %v1164_v46  ;;  %v1125_v1 = vpop.xlane.xlu1 %1124 }
 0x1a9   : > { %v1165_v49 = vmul.f32 %v1523_v48, %v1791_v14  ;;  %1536 = vrcp.f32 %v1140_v47  ;;  %v1141_v9 = vmax.f32 %v1125_v1, 1e-12 }
 0x1aa   : > { %v1525_v51 = vpop.eup %1524 }
 0x1ab   : > { %1181 = vst.msk [vmem:[%s1837_s27 + $0x38] sm:$0xff] %vm765_vm1, %v1165_v49  ;;  %v1166_v55 = vmul.f32 %v1525_v51, %v1802_v59  ;;  %1538 = vrcp.f32 %v1141_v9 }
 0x1ac   : > { %v1527_v54 = vpop.eup %1526 }
 0x1ad   : > { %1182 = vst.msk [vmem:[%s1837_s27 + $0x40] sm:$0xff] %vm765_vm1, %v1166_v55  ;;  %v1167_v56 = vmul.f32 %v1527_v54, %v1799_v22 }
 0x1ae   : > { %v1529_v58 = vpop.eup %1528 }
 0x1af   : > { %1183 = vst.msk [vmem:[%s1837_s27 + $0x48] sm:$0xff] %vm765_vm1, %v1167_v56  ;;  %v1168_v14 = vmul.f32 %v1529_v58, %v1809_v33 }
 0x1b0   : > { %v1531_v60 = vpop.eup %1530 }
 0x1b1   : > { %1184 = vst.msk [vmem:[%s1837_s27 + $0x50] sm:$0xff] %vm765_vm1, %v1168_v14  ;;  %v1169_v0 = vmul.f32 %v1531_v60, %v1807_v32 }
 0x1b2   : > { %v1533_v59 = vpop.eup %1532 }
 0x1b3   : > { %1185 = vst.msk [vmem:[%s1837_s27 + $0x58] sm:$0xff] %vm765_vm1, %v1169_v0  ;;  %v1170_v3 = vmul.f32 %v1533_v59, %v1818_v44 }
 0x1b4   : > { %v1535_v4 = vpop.eup %1534 }
 0x1b5   : > { %1186 = vst.msk [vmem:[%s1837_s27 + $0x60] sm:$0xff] %vm765_vm1, %v1170_v3  ;;  %v1171_v22 = vmul.f32 %v1535_v4, %v1815_v63 }
 0x1b6   : > { %v1537_v5 = vpop.eup %1536 }
 0x1b7   : > { %1187 = vst.msk [vmem:[%s1837_s27 + $0x68] sm:$0xff] %vm765_vm1, %v1171_v22  ;;  %v1172_v33 = vmul.f32 %v1537_v5, %v1826_v52 }
 0x1b8   : > { %v1539_v6 = vpop.eup %1538 }
 0x1b9   : > { %1188 = vst.msk [vmem:[%s1837_s27 + $0x70] sm:$0xff] %vm765_vm1, %v1172_v33  ;;  %v1173_v32 = vmul.f32 %v1539_v6, %v1823_v50 }
 0x1bb   : > { %1189 = vst.msk [vmem:[%s1837_s27 + $0x78] sm:$0xff] %vm765_vm1, %v1173_v32 }
 0x1bc PF: > { %s17_s24 = sadd.s32 1, %s1546_s24  }
 0x1bd   : > { %p14_p4 = scmp.ge.s32.totalorder %s17_s24, 4  }
 0x1bf   :  { %16 = sbr.rel (!%p14_p4) target bundleno = 1 (0x1), region = 84 }

</bundles_post_ra>
